<compile_context>
chip_gen: v6e
topology: v6e:2x2x1
jax: 0.10.0
libtpu: 0.0.40
codegen_flags: <defaults>
</compile_context>

<pallas_src>
import functools

import jax
import jax.numpy as jnp
from jax import lax
from jax.experimental import pallas as pl
from jax.experimental.pallas import tpu as pltpu


def _round_up(x, m):
    return (x + m - 1) // m * m


def _pick_row_tile(ho, wo, max_m=128):
    """Largest divisor th of ho with th*wo <= max_m and (th*wo) % 8 == 0."""
    best = None
    for th in range(1, ho + 1):
        if ho % th:
            continue
        m = th * wo
        if m <= max_m and m % 8 == 0:
            best = th
    # Fallback: whole image in one tile (block shape == full dims is always legal).
    return best if best is not None else ho


def _vmem_bytes_f32(shape):
    """Approx VMEM footprint of an f32 array (last two dims tiled to (8, 128))."""
    shape = tuple(int(d) for d in shape)
    if len(shape) < 2:
        shape = (1,) * (2 - len(shape)) + shape
    lead = 1
    for d in shape[:-2]:
        lead *= d
    return lead * _round_up(shape[-2], 8) * _round_up(shape[-1], 128) * 4


def _vmem_cap_bytes():
    try:
        cap = getattr(pltpu.get_tpu_info(), "vmem_capacity_bytes", None)
        if cap:
            return int(cap)
    except Exception:
        pass
    return 64 * 1024 * 1024  # conservative default (v7x per-core VMEM)


def _conv_bn_lrelu_kernel(x_ref, w_ref, b_ref, o_ref, *,
                          stride, kh, kw, th, wo, cin, cout, negative_slope):
    # x_ref: (Hp, Wp, Cin)       spatially padded input image (f32), one batch element
    # w_ref: (KH*KW, Cin, Cout)  BN-scale-folded weights (f32), VMEM-resident
    # b_ref: (1, Cout)           folded BN bias (f32), VMEM-resident
    # o_ref: (TH*Wo, Cout)       flat output tile (f32), row-major over (out_row, out_col)
    t = pl.program_id(1)
    row0 = pl.multiple_of(t * th * stride, th * stride)

    def ds(start, size):
        return pl.ds(start, size) if stride == 1 else pl.ds(start, size, stride)

    # Per-tap matmul accumulation (K = Cin per dot): no large live im2col patch and no
    # lane-unaligned concatenates; each tap is a plain sliced load from the resident image.
    acc = jnp.zeros((th * wo, cout), dtype=jnp.float32)
    for i in range(kh):
        for j in range(kw):
            tap = x_ref[ds(row0 + i, th), ds(j, wo), :]              # (TH, Wo, Cin)
            acc = acc + jnp.dot(tap.reshape(th * wo, cin), w_ref[i * kw + j],
                                preferred_element_type=jnp.float32)  # (TH*Wo, Cout)
    y = acc + b_ref[...]                                             # folded BN bias
    o_ref[...] = jnp.where(y > 0, y, negative_slope * y).astype(o_ref.dtype)


def convolution_layer(x_nchw, weight_oihw, gamma, beta, running_mean, running_var,
                      *, stride=1, padding=1, eps=1e-5, negative_slope=0.1):
    """Forward of ConvolutionLayer. x_nchw: (N, Cin, H, W). Returns (N, Cout, Ho, Wo) f32."""
    N, Cin, H, W = x_nchw.shape
    Cout, _, KH, KW = weight_oihw.shape
    Ho = (H + 2 * padding - KH) // stride + 1
    Wo = (W + 2 * padding - KW) // stride + 1
    Hp, Wp = H + 2 * padding, W + 2 * padding

    # ---- fold BatchNorm (eval mode) into the conv weights ----
    scale = (gamma / jnp.sqrt(running_var + eps)).astype(jnp.float32)      # (Cout,)
    bias = (beta - running_mean * scale).astype(jnp.float32)               # (Cout,)
    w = jnp.transpose(weight_oihw.astype(jnp.float32), (2, 3, 1, 0))       # (KH, KW, Cin, Cout)
    w = (w * scale[None, None, None, :]).reshape(KH * KW, Cin, Cout)       # scale folded
    bias2d = bias.reshape(1, Cout)

    # ---- input: NCHW -> NHWC, spatial zero-pad only (no channel padding) ----
    x = jnp.transpose(x_nchw.astype(jnp.float32), (0, 2, 3, 1))
    x = jnp.pad(x, ((0, 0), (padding, padding), (padding, padding), (0, 0)))

    # ---- tiling ----
    # Bigger row tiles amortize per-grid-step overhead, but with narrow (sub-128-lane)
    # channel counts every output row costs a full lane-group of vregs, so keep M modest
    # there to avoid register spills.
    max_m = 512 if min(Cin, Cout) >= 64 else 128
    TH = _pick_row_tile(Ho, Wo, max_m=max_m)
    n_row = Ho // TH
    M = TH * Wo

    kernel = functools.partial(
        _conv_bn_lrelu_kernel, stride=stride, kh=KH, kw=KW, th=TH, wo=Wo,
        cin=Cin, cout=Cout, negative_slope=negative_slope)

    # VMEM budget from the real (tile-padded) footprints, capped by hardware capacity.
    needed = (2 * _vmem_bytes_f32((Hp, Wp, Cin))           # input block (double-buffered)
              + 2 * _vmem_bytes_f32((M, Cout))             # output block (double-buffered)
              + 2 * _vmem_bytes_f32((KH * KW, Cin, Cout))  # resident weights
              + 2 * _vmem_bytes_f32((1, Cout))             # resident bias
              + 2 * _vmem_bytes_f32((M, Cin))              # tap temporaries
              + 2 * _vmem_bytes_f32((M, Cout))             # accumulator / spill slack
              + (4 << 20))                                 # compiler scratch headroom
    cap = _vmem_cap_bytes()
    vmem_limit = int(min(max(needed, 16 << 20), int(0.9 * cap)))

    out_flat = pl.pallas_call(
        kernel,
        out_shape=jax.ShapeDtypeStruct((N, Ho * Wo, Cout), jnp.float32),
        grid=(N, n_row),
        in_specs=[
            # Whole padded image per batch element; the index is constant along the row-tile
            # axis, so the image is only re-DMA'd when the batch index changes.
            pl.BlockSpec((None, Hp, Wp, Cin), lambda n, t: (n, 0, 0, 0)),
            # Weights / bias: constant index map -> fetched once, VMEM-resident.
            pl.BlockSpec((KH * KW, Cin, Cout), lambda n, t: (0, 0, 0)),
            pl.BlockSpec((1, Cout), lambda n, t: (0, 0)),
        ],
        out_specs=pl.BlockSpec((None, M, Cout), lambda n, t: (n, t, 0)),
        compiler_params=pltpu.CompilerParams(
            dimension_semantics=("parallel", "arbitrary"),
            vmem_limit_bytes=vmem_limit),
    )(x, w, bias2d)

    out = out_flat.reshape(N, Ho, Wo, Cout)
    return jnp.transpose(out, (0, 3, 1, 2))   # NHWC -> NCHW (public API matches PyTorch)


def _reference(x, w, gamma, beta, mean, var, *, stride, padding, eps=1e-5, slope=0.1):
    """Pure f32 reference (PyTorch eval-mode math)."""
    y = lax.conv_general_dilated(
        x.astype(jnp.float32), w.astype(jnp.float32),
        window_strides=(stride, stride),
        padding=[(padding, padding), (padding, padding)],
        dimension_numbers=("NCHW", "OIHW", "NCHW"),
        precision=lax.Precision.HIGHEST)
    s = gamma / jnp.sqrt(var + eps)
    b = beta - mean * s
    y = y * s[None, :, None, None] + b[None, :, None, None]
    return jnp.where(y > 0, y, slope * y)


if __name__ == "__main__":
    # Shapes consistent with ConvolutionLayer(4, 8, 3, 1, 1, bias=False)
    N, Cin, H, W = 2, 4, 16, 16
    Cout, K, stride, padding = 8, 3, 1, 1

    key = jax.random.PRNGKey(0)
    k_x, k_w, k_g, k_b, k_m, k_v = jax.random.split(key, 6)

    x = jax.random.normal(k_x, (N, Cin, H, W), dtype=jnp.float32)
    weight = jax.random.normal(k_w, (Cout, Cin, K, K), dtype=jnp.float32) * 0.1
    gamma = 1.0 + 0.1 * jax.random.normal(k_g, (Cout,), dtype=jnp.float32)
    beta = 0.1 * jax.random.normal(k_b, (Cout,), dtype=jnp.float32)
    running_mean = 0.1 * jax.random.normal(k_m, (Cout,), dtype=jnp.float32)
    running_var = jnp.abs(1.0 + 0.1 * jax.random.normal(k_v, (Cout,), dtype=jnp.float32))

    fwd = jax.jit(functools.partial(convolution_layer, stride=stride, padding=padding))
    out = jax.block_until_ready(fwd(x, weight, gamma, beta, running_mean, running_var))

    assert out.shape == (N, Cout, H, W), out.shape

    ref = _reference(x, weight, gamma, beta, running_mean, running_var,
                     stride=stride, padding=padding)
    max_err = float(jnp.max(jnp.abs(out - ref)))
    assert jnp.allclose(out, ref, atol=5e-3, rtol=5e-3), \
        f"mismatch vs f32 reference (max abs err {max_err:.3e})"

    print("KERNEL_OK")
</pallas_src>

<mosaic_0001>
module attributes {stable_mosaic.version = 11 : i64} {
  func.func @_conv_bn_lrelu_kernel(%arg0: i32, %arg1: i32, %arg2: memref<1x18x18x4xf32, #tpu.memory_space<vmem>>, %arg3: memref<9x4x8xf32, #tpu.memory_space<vmem>>, %arg4: memref<1x8xf32, #tpu.memory_space<vmem>>, %arg5: memref<1x128x8xf32, #tpu.memory_space<vmem>>) attributes {dimension_semantics = [#tpu.dimension_semantics<parallel>, #tpu.dimension_semantics<arbitrary>], iteration_bounds = array<i64: 2, 2>, scalar_prefetch = 0 : i64, scratch_operands = 0 : i64, tpu.core_type = #tpu.core_type<tc>, window_params = [{transform_indices = @transform_0, window_bounds = array<i64: 1, 18, 18, 4>}, {pipeline_mode = #tpu.pipeline_mode<synchronous>, transform_indices = @transform_1, window_bounds = array<i64: 9, 4, 8>}, {pipeline_mode = #tpu.pipeline_mode<synchronous>, transform_indices = @transform_2, window_bounds = array<i64: 1, 8>}, {transform_indices = @transform_3, window_bounds = array<i64: 1, 128, 8>}]} {
    %c8_i32 = arith.constant 8 : i32
    %0 = arith.muli %arg1, %c8_i32 : i32
    %c1_i32 = arith.constant 1 : i32
    %1 = arith.muli %0, %c1_i32 : i32
    %2 = tpu.assume_multiple %1, 8 : i32
    %cst = arith.constant 0.000000e+00 : f32
    %3 = vector.broadcast %cst : f32 to vector<128x8xf32>
    %c0_i32 = arith.constant 0 : i32
    %4 = arith.addi %2, %c0_i32 : i32
    %c0 = arith.constant 0 : index
    %5 = arith.index_cast %4 : i32 to index
    %c0_0 = arith.constant 0 : index
    %c0_1 = arith.constant 0 : index
    %6 = vector.load %arg2[%c0, %5, %c0_0, %c0_1] : memref<1x18x18x4xf32, #tpu.memory_space<vmem>>, vector<1x8x16x4xf32>
    %7 = vector.shape_cast %6 : vector<1x8x16x4xf32> to vector<8x16x4xf32>
    %8 = vector.shape_cast %7 : vector<8x16x4xf32> to vector<128x4xf32>
    %c0_2 = arith.constant 0 : index
    %c0_3 = arith.constant 0 : index
    %c0_4 = arith.constant 0 : index
    %9 = vector.load %arg3[%c0_2, %c0_3, %c0_4] : memref<9x4x8xf32, #tpu.memory_space<vmem>>, vector<1x4x8xf32>
    %10 = vector.shape_cast %9 : vector<1x4x8xf32> to vector<4x8xf32>
    %cst_5 = arith.constant dense<0.000000e+00> : vector<128x8xf32>
    %11 = tpu.matmul %8, %10, %cst_5 {dimension_numbers = #tpu.dot_dimension_numbers<[1], [0], [0], [1], [0, 0, 1, 1], [], []>} : vector<128x4xf32>, vector<4x8xf32>, vector<128x8xf32> -> vector<128x8xf32>
    %12 = arith.addf %3, %11 : vector<128x8xf32>
    %c0_i32_6 = arith.constant 0 : i32
    %13 = arith.addi %2, %c0_i32_6 : i32
    %c0_7 = arith.constant 0 : index
    %14 = arith.index_cast %13 : i32 to index
    %c1 = arith.constant 1 : index
    %c0_8 = arith.constant 0 : index
    %15 = vector.load %arg2[%c0_7, %14, %c1, %c0_8] : memref<1x18x18x4xf32, #tpu.memory_space<vmem>>, vector<1x8x16x4xf32>
    %16 = vector.shape_cast %15 : vector<1x8x16x4xf32> to vector<8x16x4xf32>
    %17 = vector.shape_cast %16 : vector<8x16x4xf32> to vector<128x4xf32>
    %c1_9 = arith.constant 1 : index
    %c0_10 = arith.constant 0 : index
    %c0_11 = arith.constant 0 : index
    %18 = vector.load %arg3[%c1_9, %c0_10, %c0_11] : memref<9x4x8xf32, #tpu.memory_space<vmem>>, vector<1x4x8xf32>
    %19 = vector.shape_cast %18 : vector<1x4x8xf32> to vector<4x8xf32>
    %cst_12 = arith.constant dense<0.000000e+00> : vector<128x8xf32>
    %20 = tpu.matmul %17, %19, %cst_12 {dimension_numbers = #tpu.dot_dimension_numbers<[1], [0], [0], [1], [0, 0, 1, 1], [], []>} : vector<128x4xf32>, vector<4x8xf32>, vector<128x8xf32> -> vector<128x8xf32>
    %21 = arith.addf %12, %20 : vector<128x8xf32>
    %c0_i32_13 = arith.constant 0 : i32
    %22 = arith.addi %2, %c0_i32_13 : i32
    %c0_14 = arith.constant 0 : index
    %23 = arith.index_cast %22 : i32 to index
    %c2 = arith.constant 2 : index
    %c0_15 = arith.constant 0 : index
    %24 = vector.load %arg2[%c0_14, %23, %c2, %c0_15] : memref<1x18x18x4xf32, #tpu.memory_space<vmem>>, vector<1x8x16x4xf32>
    %25 = vector.shape_cast %24 : vector<1x8x16x4xf32> to vector<8x16x4xf32>
    %26 = vector.shape_cast %25 : vector<8x16x4xf32> to vector<128x4xf32>
    %c2_16 = arith.constant 2 : index
    %c0_17 = arith.constant 0 : index
    %c0_18 = arith.constant 0 : index
    %27 = vector.load %arg3[%c2_16, %c0_17, %c0_18] : memref<9x4x8xf32, #tpu.memory_space<vmem>>, vector<1x4x8xf32>
    %28 = vector.shape_cast %27 : vector<1x4x8xf32> to vector<4x8xf32>
    %cst_19 = arith.constant dense<0.000000e+00> : vector<128x8xf32>
    %29 = tpu.matmul %26, %28, %cst_19 {dimension_numbers = #tpu.dot_dimension_numbers<[1], [0], [0], [1], [0, 0, 1, 1], [], []>} : vector<128x4xf32>, vector<4x8xf32>, vector<128x8xf32> -> vector<128x8xf32>
    %30 = arith.addf %21, %29 : vector<128x8xf32>
    %c1_i32_20 = arith.constant 1 : i32
    %31 = arith.addi %2, %c1_i32_20 : i32
    %c0_21 = arith.constant 0 : index
    %32 = arith.index_cast %31 : i32 to index
    %c0_22 = arith.constant 0 : index
    %c0_23 = arith.constant 0 : index
    %33 = vector.load %arg2[%c0_21, %32, %c0_22, %c0_23] : memref<1x18x18x4xf32, #tpu.memory_space<vmem>>, vector<1x8x16x4xf32>
    %34 = vector.shape_cast %33 : vector<1x8x16x4xf32> to vector<8x16x4xf32>
    %35 = vector.shape_cast %34 : vector<8x16x4xf32> to vector<128x4xf32>
    %c3 = arith.constant 3 : index
    %c0_24 = arith.constant 0 : index
    %c0_25 = arith.constant 0 : index
    %36 = vector.load %arg3[%c3, %c0_24, %c0_25] : memref<9x4x8xf32, #tpu.memory_space<vmem>>, vector<1x4x8xf32>
    %37 = vector.shape_cast %36 : vector<1x4x8xf32> to vector<4x8xf32>
    %cst_26 = arith.constant dense<0.000000e+00> : vector<128x8xf32>
    %38 = tpu.matmul %35, %37, %cst_26 {dimension_numbers = #tpu.dot_dimension_numbers<[1], [0], [0], [1], [0, 0, 1, 1], [], []>} : vector<128x4xf32>, vector<4x8xf32>, vector<128x8xf32> -> vector<128x8xf32>
    %39 = arith.addf %30, %38 : vector<128x8xf32>
    %c1_i32_27 = arith.constant 1 : i32
    %40 = arith.addi %2, %c1_i32_27 : i32
    %c0_28 = arith.constant 0 : index
    %41 = arith.index_cast %40 : i32 to index
    %c1_29 = arith.constant 1 : index
    %c0_30 = arith.constant 0 : index
    %42 = vector.load %arg2[%c0_28, %41, %c1_29, %c0_30] : memref<1x18x18x4xf32, #tpu.memory_space<vmem>>, vector<1x8x16x4xf32>
    %43 = vector.shape_cast %42 : vector<1x8x16x4xf32> to vector<8x16x4xf32>
    %44 = vector.shape_cast %43 : vector<8x16x4xf32> to vector<128x4xf32>
    %c4 = arith.constant 4 : index
    %c0_31 = arith.constant 0 : index
    %c0_32 = arith.constant 0 : index
    %45 = vector.load %arg3[%c4, %c0_31, %c0_32] : memref<9x4x8xf32, #tpu.memory_space<vmem>>, vector<1x4x8xf32>
    %46 = vector.shape_cast %45 : vector<1x4x8xf32> to vector<4x8xf32>
    %cst_33 = arith.constant dense<0.000000e+00> : vector<128x8xf32>
    %47 = tpu.matmul %44, %46, %cst_33 {dimension_numbers = #tpu.dot_dimension_numbers<[1], [0], [0], [1], [0, 0, 1, 1], [], []>} : vector<128x4xf32>, vector<4x8xf32>, vector<128x8xf32> -> vector<128x8xf32>
    %48 = arith.addf %39, %47 : vector<128x8xf32>
    %c1_i32_34 = arith.constant 1 : i32
    %49 = arith.addi %2, %c1_i32_34 : i32
    %c0_35 = arith.constant 0 : index
    %50 = arith.index_cast %49 : i32 to index
    %c2_36 = arith.constant 2 : index
    %c0_37 = arith.constant 0 : index
    %51 = vector.load %arg2[%c0_35, %50, %c2_36, %c0_37] : memref<1x18x18x4xf32, #tpu.memory_space<vmem>>, vector<1x8x16x4xf32>
    %52 = vector.shape_cast %51 : vector<1x8x16x4xf32> to vector<8x16x4xf32>
    %53 = vector.shape_cast %52 : vector<8x16x4xf32> to vector<128x4xf32>
    %c5 = arith.constant 5 : index
    %c0_38 = arith.constant 0 : index
    %c0_39 = arith.constant 0 : index
    %54 = vector.load %arg3[%c5, %c0_38, %c0_39] : memref<9x4x8xf32, #tpu.memory_space<vmem>>, vector<1x4x8xf32>
    %55 = vector.shape_cast %54 : vector<1x4x8xf32> to vector<4x8xf32>
    %cst_40 = arith.constant dense<0.000000e+00> : vector<128x8xf32>
    %56 = tpu.matmul %53, %55, %cst_40 {dimension_numbers = #tpu.dot_dimension_numbers<[1], [0], [0], [1], [0, 0, 1, 1], [], []>} : vector<128x4xf32>, vector<4x8xf32>, vector<128x8xf32> -> vector<128x8xf32>
    %57 = arith.addf %48, %56 : vector<128x8xf32>
    %c2_i32 = arith.constant 2 : i32
    %58 = arith.addi %2, %c2_i32 : i32
    %c0_41 = arith.constant 0 : index
    %59 = arith.index_cast %58 : i32 to index
    %c0_42 = arith.constant 0 : index
    %c0_43 = arith.constant 0 : index
    %60 = vector.load %arg2[%c0_41, %59, %c0_42, %c0_43] : memref<1x18x18x4xf32, #tpu.memory_space<vmem>>, vector<1x8x16x4xf32>
    %61 = vector.shape_cast %60 : vector<1x8x16x4xf32> to vector<8x16x4xf32>
    %62 = vector.shape_cast %61 : vector<8x16x4xf32> to vector<128x4xf32>
    %c6 = arith.constant 6 : index
    %c0_44 = arith.constant 0 : index
    %c0_45 = arith.constant 0 : index
    %63 = vector.load %arg3[%c6, %c0_44, %c0_45] : memref<9x4x8xf32, #tpu.memory_space<vmem>>, vector<1x4x8xf32>
    %64 = vector.shape_cast %63 : vector<1x4x8xf32> to vector<4x8xf32>
    %cst_46 = arith.constant dense<0.000000e+00> : vector<128x8xf32>
    %65 = tpu.matmul %62, %64, %cst_46 {dimension_numbers = #tpu.dot_dimension_numbers<[1], [0], [0], [1], [0, 0, 1, 1], [], []>} : vector<128x4xf32>, vector<4x8xf32>, vector<128x8xf32> -> vector<128x8xf32>
    %66 = arith.addf %57, %65 : vector<128x8xf32>
    %c2_i32_47 = arith.constant 2 : i32
    %67 = arith.addi %2, %c2_i32_47 : i32
    %c0_48 = arith.constant 0 : index
    %68 = arith.index_cast %67 : i32 to index
    %c1_49 = arith.constant 1 : index
    %c0_50 = arith.constant 0 : index
    %69 = vector.load %arg2[%c0_48, %68, %c1_49, %c0_50] : memref<1x18x18x4xf32, #tpu.memory_space<vmem>>, vector<1x8x16x4xf32>
    %70 = vector.shape_cast %69 : vector<1x8x16x4xf32> to vector<8x16x4xf32>
    %71 = vector.shape_cast %70 : vector<8x16x4xf32> to vector<128x4xf32>
    %c7 = arith.constant 7 : index
    %c0_51 = arith.constant 0 : index
    %c0_52 = arith.constant 0 : index
    %72 = vector.load %arg3[%c7, %c0_51, %c0_52] : memref<9x4x8xf32, #tpu.memory_space<vmem>>, vector<1x4x8xf32>
    %73 = vector.shape_cast %72 : vector<1x4x8xf32> to vector<4x8xf32>
    %cst_53 = arith.constant dense<0.000000e+00> : vector<128x8xf32>
    %74 = tpu.matmul %71, %73, %cst_53 {dimension_numbers = #tpu.dot_dimension_numbers<[1], [0], [0], [1], [0, 0, 1, 1], [], []>} : vector<128x4xf32>, vector<4x8xf32>, vector<128x8xf32> -> vector<128x8xf32>
    %75 = arith.addf %66, %74 : vector<128x8xf32>
    %c2_i32_54 = arith.constant 2 : i32
    %76 = arith.addi %2, %c2_i32_54 : i32
    %c0_55 = arith.constant 0 : index
    %77 = arith.index_cast %76 : i32 to index
    %c2_56 = arith.constant 2 : index
    %c0_57 = arith.constant 0 : index
    %78 = vector.load %arg2[%c0_55, %77, %c2_56, %c0_57] : memref<1x18x18x4xf32, #tpu.memory_space<vmem>>, vector<1x8x16x4xf32>
    %79 = vector.shape_cast %78 : vector<1x8x16x4xf32> to vector<8x16x4xf32>
    %80 = vector.shape_cast %79 : vector<8x16x4xf32> to vector<128x4xf32>
    %c8 = arith.constant 8 : index
    %c0_58 = arith.constant 0 : index
    %c0_59 = arith.constant 0 : index
    %81 = vector.load %arg3[%c8, %c0_58, %c0_59] : memref<9x4x8xf32, #tpu.memory_space<vmem>>, vector<1x4x8xf32>
    %82 = vector.shape_cast %81 : vector<1x4x8xf32> to vector<4x8xf32>
    %cst_60 = arith.constant dense<0.000000e+00> : vector<128x8xf32>
    %83 = tpu.matmul %80, %82, %cst_60 {dimension_numbers = #tpu.dot_dimension_numbers<[1], [0], [0], [1], [0, 0, 1, 1], [], []>} : vector<128x4xf32>, vector<4x8xf32>, vector<128x8xf32> -> vector<128x8xf32>
    %84 = arith.addf %75, %83 : vector<128x8xf32>
    %c0_61 = arith.constant 0 : index
    %c0_62 = arith.constant 0 : index
    %85 = vector.load %arg4[%c0_61, %c0_62] : memref<1x8xf32, #tpu.memory_space<vmem>>, vector<1x8xf32>
    %86 = vector.broadcast %85 : vector<1x8xf32> to vector<128x8xf32>
    %87 = arith.addf %84, %86 : vector<128x8xf32>
    %cst_63 = arith.constant 0.000000e+00 : f32
    %88 = vector.broadcast %cst_63 : f32 to vector<128x8xf32>
    %89 = arith.cmpf ogt, %87, %88 : vector<128x8xf32>
    %cst_64 = arith.constant 1.000000e-01 : f32
    %90 = vector.broadcast %cst_64 : f32 to vector<128x8xf32>
    %91 = arith.mulf %90, %87 : vector<128x8xf32>
    %92 = arith.select %89, %87, %91 : vector<128x8xi1>, vector<128x8xf32>
    %c0_65 = arith.constant 0 : index
    %c0_66 = arith.constant 0 : index
    %c0_67 = arith.constant 0 : index
    %93 = vector.load %arg5[%c0_65, %c0_66, %c0_67] : memref<1x128x8xf32, #tpu.memory_space<vmem>>, vector<1x128x8xf32>
    %94 = vector.shape_cast %93 : vector<1x128x8xf32> to vector<128x8xf32>
    %95 = vector.shape_cast %92 : vector<128x8xf32> to vector<1x128x8xf32>
    tpu.vector_store %arg5[%c0_65, %c0_66, %c0_67], %95 {strides = array<i32>} : memref<1x128x8xf32, #tpu.memory_space<vmem>>, vector<1x128x8xf32>,
    return
  }
  func.func @transform_0(%arg0: i32, %arg1: i32) -> (i32, i32, i32, i32) {
    %c0_i32 = arith.constant 0 : i32
    %c0_i32_0 = arith.constant 0 : i32
    %c0_i32_1 = arith.constant 0 : i32
    %c0_i32_2 = arith.constant 0 : i32
    return %arg0, %c0_i32, %c0_i32_0, %c0_i32_1 : i32, i32, i32, i32
  }
  func.func @transform_1(%arg0: i32, %arg1: i32) -> (i32, i32, i32) {
    %c0_i32 = arith.constant 0 : i32
    %c0_i32_0 = arith.constant 0 : i32
    %c0_i32_1 = arith.constant 0 : i32
    %c0_i32_2 = arith.constant 0 : i32
    return %c0_i32, %c0_i32_0, %c0_i32_1 : i32, i32, i32
  }
  func.func @transform_2(%arg0: i32, %arg1: i32) -> (i32, i32) {
    %c0_i32 = arith.constant 0 : i32
    %c0_i32_0 = arith.constant 0 : i32
    %c0_i32_1 = arith.constant 0 : i32
    return %c0_i32, %c0_i32_0 : i32, i32
  }
  func.func @transform_3(%arg0: i32, %arg1: i32) -> (i32, i32, i32) {
    %c0_i32 = arith.constant 0 : i32
    %c0_i32_0 = arith.constant 0 : i32
    return %arg0, %arg1, %c0_i32 : i32, i32, i32
  }
}

</mosaic_0001>

<bundles_post_ra>
// kernel: convolution_layer.1
= control target key start
LH: loop header
LB: loop body
LE: loop exit
PB: predicated region body
PF: predicated region fallthrough
CT: control target
= control target key end

     0   :  { %s3189_s12 = smov 0   ;;  %s3191_s13 = smov 0   ;;  %s3994_s0 = inlined_call_operand.vmem [shape: f32[2,18,18,4], index: 0, kind: input, shape index: {}]   ;;  %s3995_s1 = inlined_call_operand.vmem [shape: f32[9,4,8], index: 1, kind: input, shape index: {}]   ;;  %s3996_s2 = inlined_call_operand.vmem [shape: f32[1,8], index: 2, kind: input, shape index: {}]   ;;  %s3997_s3 = inlined_call_operand.vmem [shape: f32[2,256,8], index: 3, kind: output, shape index: {}]  }
   0x1   :  { %s3193_s14 = smov 0   ;;  %s3195_s15 = smov 0  }
   0x2   :  { %s3197_s16 = smov 0  }
   0x3 LB: > { %s22_s17 = sadd.s32 1, %s3159_s14  ;;  %s25_s18 = sadd.s32 1, %s3163_s15  ;;  %s3167_s16 = sphi %s3197_s16, %s13_s16   ;;  %s3163_s15 = sphi %s3195_s15, %s4034_s15   ;;  %s3159_s14 = sphi %s3193_s14, %s4033_s14   ;;  %s3155_s13 = sphi %s3191_s13, %s4032_s13   ;;  %s3151_s12 = sphi %s3189_s12, %s4031_s12  }
   0x4   : > { %p23_p0 = scmp.ge.s32.totalorder %s22_s17, 2  ;;  %p2428_p1 = scmp.ge.s32.totalorder %s3167_s16, 1 }
   0x5   : > { %p151_p2 = scmp.lt.s32.totalorder %s3167_s16, 5 }
   0x6   : > { %s4036_s17 = smov (%p23_p0, %s22_s17), 0  ;;  %s4038_s18 = smov (!%p23_p0, %s25_s18), %s3163_s15 }
   0x7   : > { %p152_p3 = pnand %p2428_p1, %p151_p2  ;;  %p27_p4 = scmp.ge.s32.totalorder %s4038_s18, 2 }
   0x9   : > { %s4040_s18 = smov (%p27_p4, %s4038_s18), 0  ;;  %155 = sbr.rel (%p152_p3) target bundleno = 369 (0x171), region = 32 }
   0xe   : > { %v2435_v0 = vld [vmem:[%s3995_s1 + $0x4] sm:$0xf]  ;;  %vm281_vm0 = vcmask 1043456   ;;  %p179_p5 = scmp.lt.s32.totalorder %s3155_s13, 1  ;;  %v213_v1 = vld [vmem:[%s3995_s1] sm:$0xf] }
   0xf   : > { %3086 = vmatprep.subr.msk.mxu1 %vm281_vm0, %v2435_v0  ;;  %2852 = vmatprep.subr.msk.mxu0 %vm281_vm0, %v2435_v0  ;;  %v2470_v2 = vld [vmem:[%s3995_s1 + $0x8] sm:$0xf]  ;;  %s2434_s25 = smul.u32 192, %s3151_s12  ;;  %vm232_vm1 = vcmask 31744   ;;  %v2506_v9 = vld [vmem:[%s3995_s1 + $0xc] sm:$0xf] }
  0x10   : > { %3087 = vmatpush3.msk.msra.mxu1 %vm281_vm0, %v2435_v0  ;;  %2853 = vmatpush3.msk.msra.mxu0 %vm281_vm0, %v2435_v0  ;;  %s4042_s13 = smov (!%p179_p5, %s3155_s13), 1  ;;  %v2540_v10 = vld [vmem:[%s3995_s1 + $0x10] sm:$0xf]  ;;  %v3346_v27 = vld [vmem:[%s3995_s1 + $0x14] sm:$0xf]  ;;  %s2430_s23 = sshll.u32 %s3151_s12, 4 }
  0x11   : > { %2878 = vmatprep.subr.msk.mxu1 %vm281_vm0, %v213_v1  ;;  %2904 = vmatprep.subr.msk.mxu0 %vm281_vm0, %v2470_v2  ;;  %s3088_s26 = smul.u32 432, %s4042_s13  ;;  %v3351_v28 = vld [vmem:[%s3995_s1 + $0x18] sm:$0xf]  ;;  %v2644_v55 = vld [vmem:[%s3995_s1 + $0x1c] sm:$0xf]  ;;  %p3824_p6 = scmp.lt.s32.totalorder %s2430_s23, 31 }
  0x12   : > { %v2678_v56 = vld [vmem:[%s3995_s1 + $0x20] sm:$0xf]  ;;  %s2431_s12 = sshll.u32 %s4042_s13, 5  ;;  %vm2313_vm2 = vcmask 64512  }
  0x13   : > { %s183_s29 = scalar_lea.vmem %s3994_s0, %s3088_s26  ;;  %s4044_s23 = smov (!%p3824_p6, %s2430_s23), 31 }
  0x14   : > { %s3243_s30 = scalar_lea.vmem %s183_s29, %s2434_s25  ;;  %s3867_s13 = sadd.s32 %s2431_s12, %s4044_s23 }
  0x15   : > { %v214_v3 = vld [vmem:[%s3243_s30 + $0x1] sm:$0xff]  ;;  %v215_v5 = vld [vmem:[%s3243_s30 + $0x9] sm:$0xff]  ;;  %v3257_v7 = vld [vmem:[%s3243_s30 + $0x19] sm:$0xff]  ;;  %s2432_s27 = sshll.u32 %s3867_s13, 3 }
  0x16   : > { %v3247_v4 = vld [vmem:[%s3243_s30 + $0x61] sm:$0xff]  ;;  %2854 = vmatprep.mubr.msk.f32.mxu0 %vm232_vm1, %v214_v3  ;;  %v3254_v6 = vld [vmem:[%s3243_s30 + $0x69] sm:$0xff]  ;;  %v3260_v8 = vld [vmem:[%s3243_s30 + $0x79] sm:$0xff] }
  0x17   : > { %2866 = vmatprep.mubr.msk.f32.mxu1 %vm232_vm1, %v3247_v4  ;;  %2855 = vmatmul.mubr.msk.f32.vlgmr.msra.gmra.mxu0 %vm232_vm1, %v215_v5  ;;  %v3274_v11 = vld [vmem:[%s3243_s30 + $0x21] sm:$0xff]  ;;  %v3284_v13 = vld [vmem:[%s3243_s30 + $0x31] sm:$0xff]  ;;  %v3300_v15 = vld [vmem:[%s3243_s30 + $0x39] sm:$0xff] }
  0x18   : > { %2867 = vmatmul.mubr.msk.f32.vlgmr.msra.gmra.mxu1 %vm232_vm1, %v3254_v6  ;;  %2905 = vmatpush3.msk.msra.mxu0 %vm281_vm0, %v2470_v2  ;;  %v3277_v12 = vld [vmem:[%s3243_s30 + $0x81] sm:$0xff]  ;;  %v3287_v14 = vld [vmem:[%s3243_s30 + $0x91] sm:$0xff]  ;;  %v3303_v16 = vld [vmem:[%s3243_s30 + $0x99] sm:$0xff] }
  0x19   : > { %2879 = vmatpush3.msk.msra.mxu1 %vm281_vm0, %v213_v1  ;;  %2857 = vmatprep.mubr.msk.f32.mxu0 %vm232_vm1, %v3257_v7  ;;  %v3306_v17 = vld [vmem:[%s3243_s30 + $0x49] sm:$0xff]  ;;  %v3320_v19 = vld [vmem:[%s3243_s30 + $0x51] sm:$0xff]  ;;  %v197_v21 = vld [vmem:[%s3243_s30] sm:$0xff] }
  0x1a   : > { %2869 = vmatprep.mubr.msk.f32.mxu1 %vm232_vm1, %v3260_v8  ;;  %2930 = vmatprep.subr.msk.mxu1 %vm281_vm0, %v2506_v9  ;;  %v3309_v18 = vld [vmem:[%s3243_s30 + $0xa9] sm:$0xff]  ;;  %v3323_v20 = vld [vmem:[%s3243_s30 + $0xb1] sm:$0xff]  ;;  %v3339_v26 = vld [vmem:[%s3243_s30 + $0x1a] sm:$0xff] }
  0x1b   : > { %2956 = vmatprep.subr.msk.mxu0 %vm281_vm0, %v2540_v10  ;;  %2858 = vmatmul.mubr.msk.f32.gmra.mxu0 %vm232_vm1, %v3274_v11  ;;  %v626_v22 = vld [vmem:[%s3243_s30 + $0x2] sm:$0xff]  ;;  %v627_v24 = vld [vmem:[%s3243_s30 + $0xa] sm:$0xff]  ;;  %v3336_v25 = vld [vmem:[%s3243_s30 + $0x18] sm:$0xff] }
  0x1c   : > { %2870 = vmatmul.mubr.msk.f32.gmra.mxu1 %vm232_vm1, %v3277_v12  ;;  %2860 = vmatprep.mubr.msk.f32.mxu0 %vm232_vm1, %v3284_v13  ;;  %v198_v23 = vld [vmem:[%s3243_s30 + $0x8] sm:$0xff]  ;;  %v200_v29 = vld [vmem:[%s3243_s30 + $0x20] sm:$0xff]  ;;  %v3364_v31 = vld [vmem:[%s3243_s30 + $0x30] sm:$0xff] }
  0x1d   : > { %2872 = vmatprep.mubr.msk.f32.mxu1 %vm232_vm1, %v3287_v14  ;;  %v3357_v30 = vld [vmem:[%s3243_s30 + $0x22] sm:$0xff]  ;;  %v3367_v32 = vld [vmem:[%s3243_s30 + $0x32] sm:$0xff]  ;;  %v3384_v34 = vld [vmem:[%s3243_s30 + $0x3a] sm:$0xff] }
  0x1e   : > { %v3381_v33 = vld [vmem:[%s3243_s30 + $0x38] sm:$0xff]  ;;  %v3387_v35 = vld [vmem:[%s3243_s30 + $0x48] sm:$0xff]  ;;  %v3401_v37 = vld [vmem:[%s3243_s30 + $0x50] sm:$0xff] }
  0x1f   : > { %2861 = vmatmul.mubr.msk.f32.gmra.mxu0 %vm232_vm1, %v3300_v15  ;;  %v3390_v36 = vld [vmem:[%s3243_s30 + $0x4a] sm:$0xff]  ;;  %v3404_v38 = vld [vmem:[%s3243_s30 + $0x52] sm:$0xff]  ;;  %v3407_v39 = vld [vmem:[%s3243_s30 + $0x60] sm:$0xff] }
  0x20   : > { %2873 = vmatmul.mubr.msk.f32.gmra.mxu1 %vm232_vm1, %v3303_v16  ;;  %2863 = vmatprep.mubr.msk.f32.mxu0 %vm232_vm1, %v3306_v17  ;;  %v3410_v40 = vld [vmem:[%s3243_s30 + $0x62] sm:$0xff]  ;;  %v3424_v42 = vld [vmem:[%s3243_s30 + $0x6a] sm:$0xff]  ;;  %v3427_v43 = vld [vmem:[%s3243_s30 + $0x78] sm:$0xff] }
  0x21   : > { %2875 = vmatprep.mubr.msk.f32.mxu1 %vm232_vm1, %v3309_v18  ;;  %v3421_v41 = vld [vmem:[%s3243_s30 + $0x68] sm:$0xff]  ;;  %v3430_v44 = vld [vmem:[%s3243_s30 + $0x7a] sm:$0xff]  ;;  %v3447_v47 = vld [vmem:[%s3243_s30 + $0x90] sm:$0xff] }
  0x22   : > { %v3441_v45 = vld [vmem:[%s3243_s30 + $0x80] sm:$0xff]  ;;  %v3450_v48 = vld [vmem:[%s3243_s30 + $0x92] sm:$0xff]  ;;  %v3467_v51 = vld [vmem:[%s3243_s30 + $0xa8] sm:$0xff] }
  0x23   : > { %2864 = vmatmul.mubr.msk.f32.gmra.mxu0 %vm232_vm1, %v3320_v19  ;;  %v3444_v46 = vld [vmem:[%s3243_s30 + $0x82] sm:$0xff]  ;;  %v3461_v49 = vld [vmem:[%s3243_s30 + $0x98] sm:$0xff]  ;;  %v3470_v52 = vld [vmem:[%s3243_s30 + $0xaa] sm:$0xff] }
  0x24   : > { %2876 = vmatmul.mubr.msk.f32.gmra.mxu1 %vm232_vm1, %v3323_v20  ;;  %2906 = vmatprep.mubr.msk.f32.mxu0 %vm232_vm1, %v626_v22  ;;  %v3464_v50 = vld [vmem:[%s3243_s30 + $0x9a] sm:$0xff]  ;;  %v3481_v53 = vld [vmem:[%s3243_s30 + $0xb0] sm:$0xff]  ;;  %v2505_v59 = vld [vmem:[%s3243_s30 + $0xc8] sm:$0xff] }
  0x25   : > { %2880 = vmatprep.mubr.msk.f32.mxu1 %vm232_vm1, %v197_v21  ;;  %v3484_v54 = vld [vmem:[%s3243_s30 + $0xb2] sm:$0xff]  ;;  %v2504_v57 = vld [vmem:[%s3243_s30 + $0xc0] sm:$0xff]  ;;  %v3566_v60 = vld [vmem:[%s3243_s30 + $0xc9] sm:$0xff] }
  0x26   : > { %v3555_v58 = vld [vmem:[%s3243_s30 + $0xc1] sm:$0xff]  ;;  %v2608_v62 = vld [vmem:[%s3243_s30 + $0xd8] sm:$0xff]  ;;  %v2573_v63 = vld [vmem:[%s3243_s30 + $0xca] sm:$0xff] }
  0x27   : > { %2907 = vmatmul.mubr.msk.f32.vlgmr.msra.gmra.mxu0 %vm232_vm1, %v627_v24  ;;  %v2572_v61 = vld [vmem:[%s3243_s30 + $0xc2] sm:$0xff]  ;;  %v2642_v1 = vld [vmem:[%s3243_s30 + $0xd9] sm:$0xff] }
  0x28   : > { %2881 = vmatmul.mubr.msk.f32.vlgmr.msra.gmra.mxu1 %vm232_vm1, %v198_v23  ;;  %2957 = vmatpush3.msk.msra.mxu0 %vm281_vm0, %v2540_v10  ;;  %v2609_v0 = vld [vmem:[%s3243_s30 + $0xe0] sm:$0xff] }
  0x29   : > { %2931 = vmatpush3.msk.msra.mxu1 %vm281_vm0, %v2506_v9  ;;  %2883 = vmatprep.mubr.msk.f32.mxu1 %vm232_vm1, %v3336_v25  ;;  %v2676_v2 = vld [vmem:[%s3243_s30 + $0xda] sm:$0xff] }
  0x2a   : > { %2909 = vmatprep.mubr.msk.f32.mxu0 %vm232_vm1, %v3339_v26  ;;  %2982 = vmatprep.subr.msk.mxu1 %vm281_vm0, %v3346_v27  ;;  %v2643_v3 = vld [vmem:[%s3243_s30 + $0xe1] sm:$0xff] }
  0x2b   : > { %3008 = vmatprep.subr.msk.mxu0 %vm281_vm0, %v3351_v28  ;;  %2910 = vmatmul.mubr.msk.f32.gmra.mxu0 %vm232_vm1, %v3357_v30 }
  0x2c   : > { %2884 = vmatmul.mubr.msk.f32.gmra.mxu1 %vm232_vm1, %v200_v29  ;;  %2912 = vmatprep.mubr.msk.f32.mxu0 %vm232_vm1, %v3367_v32 }
  0x2d   : > { %2886 = vmatprep.mubr.msk.f32.mxu1 %vm232_vm1, %v3364_v31 }
  0x2f   : > { %2913 = vmatmul.mubr.msk.f32.gmra.mxu0 %vm232_vm1, %v3384_v34 }
  0x30   : > { %2887 = vmatmul.mubr.msk.f32.gmra.mxu1 %vm232_vm1, %v3381_v33  ;;  %2915 = vmatprep.mubr.msk.f32.mxu0 %vm232_vm1, %v3390_v36 }
  0x31   : > { %2889 = vmatprep.mubr.msk.f32.mxu1 %vm232_vm1, %v3387_v35 }
  0x33   : > { %2916 = vmatmul.mubr.msk.f32.gmra.mxu0 %vm232_vm1, %v3404_v38 }
  0x34   : > { %2890 = vmatmul.mubr.msk.f32.gmra.mxu1 %vm232_vm1, %v3401_v37  ;;  %2918 = vmatprep.mubr.msk.f32.mxu0 %vm232_vm1, %v3410_v40 }
  0x35   : > { %2892 = vmatprep.mubr.msk.f32.mxu1 %vm232_vm1, %v3407_v39 }
  0x37   : > { %2919 = vmatmul.mubr.msk.f32.gmra.mxu0 %vm232_vm1, %v3424_v42 }
  0x38   : > { %2893 = vmatmul.mubr.msk.f32.gmra.mxu1 %vm232_vm1, %v3421_v41  ;;  %2921 = vmatprep.mubr.msk.f32.mxu0 %vm232_vm1, %v3430_v44 }
  0x39   : > { %2895 = vmatprep.mubr.msk.f32.mxu1 %vm232_vm1, %v3427_v43 }
  0x3b   : > { %2922 = vmatmul.mubr.msk.f32.gmra.mxu0 %vm232_vm1, %v3444_v46 }
  0x3c   : > { %2896 = vmatmul.mubr.msk.f32.gmra.mxu1 %vm232_vm1, %v3441_v45  ;;  %2924 = vmatprep.mubr.msk.f32.mxu0 %vm232_vm1, %v3450_v48 }
  0x3d   : > { %2898 = vmatprep.mubr.msk.f32.mxu1 %vm232_vm1, %v3447_v47 }
  0x3f   : > { %2925 = vmatmul.mubr.msk.f32.gmra.mxu0 %vm232_vm1, %v3464_v50 }
  0x40   : > { %2899 = vmatmul.mubr.msk.f32.gmra.mxu1 %vm232_vm1, %v3461_v49  ;;  %2927 = vmatprep.mubr.msk.f32.mxu0 %vm232_vm1, %v3470_v52 }
  0x41   : > { %2901 = vmatprep.mubr.msk.f32.mxu1 %vm232_vm1, %v3467_v51 }
  0x43   : > { %2928 = vmatmul.mubr.msk.f32.gmra.mxu0 %vm232_vm1, %v3484_v54 }
  0x44   : > { %2902 = vmatmul.mubr.msk.f32.gmra.mxu1 %vm232_vm1, %v3481_v53  ;;  %2958 = vmatprep.mubr.msk.f32.mxu0 %vm232_vm1, %v3257_v7 }
  0x45   : > { %2932 = vmatprep.mubr.msk.f32.mxu1 %vm232_vm1, %v3336_v25 }
  0x47   : > { %2959 = vmatmul.mubr.msk.f32.vlgmr.msra.gmra.mxu0 %vm232_vm1, %v3274_v11 }
  0x48   : > { %2933 = vmatmul.mubr.msk.f32.vlgmr.msra.gmra.mxu1 %vm232_vm1, %v200_v29  ;;  %3009 = vmatpush3.msk.msra.mxu0 %vm281_vm0, %v3351_v28 }
  0x49   : > { %2983 = vmatpush3.msk.msra.mxu1 %vm281_vm0, %v3346_v27  ;;  %2935 = vmatprep.mubr.msk.f32.mxu1 %vm232_vm1, %v3364_v31 }
  0x4a   : > { %2961 = vmatprep.mubr.msk.f32.mxu0 %vm232_vm1, %v3284_v13  ;;  %3034 = vmatprep.subr.msk.mxu1 %vm281_vm0, %v2644_v55 }
  0x4b   : > { %3060 = vmatprep.subr.msk.mxu0 %vm281_vm0, %v2678_v56  ;;  %2962 = vmatmul.mubr.msk.f32.gmra.mxu0 %vm232_vm1, %v3300_v15 }
  0x4c   : > { %2936 = vmatmul.mubr.msk.f32.gmra.mxu1 %vm232_vm1, %v3381_v33  ;;  %2964 = vmatprep.mubr.msk.f32.mxu0 %vm232_vm1, %v3306_v17 }
  0x4d   : > { %2938 = vmatprep.mubr.msk.f32.mxu1 %vm232_vm1, %v3387_v35 }
  0x4f   : > { %2965 = vmatmul.mubr.msk.f32.gmra.mxu0 %vm232_vm1, %v3320_v19 }
  0x50   : > { %2939 = vmatmul.mubr.msk.f32.gmra.mxu1 %vm232_vm1, %v3401_v37  ;;  %2967 = vmatprep.mubr.msk.f32.mxu0 %vm232_vm1, %v3247_v4 }
  0x51   : > { %2941 = vmatprep.mubr.msk.f32.mxu1 %vm232_vm1, %v3407_v39 }
  0x53   : > { %2968 = vmatmul.mubr.msk.f32.gmra.mxu0 %vm232_vm1, %v3254_v6 }
  0x54   : > { %2942 = vmatmul.mubr.msk.f32.gmra.mxu1 %vm232_vm1, %v3421_v41  ;;  %2970 = vmatprep.mubr.msk.f32.mxu0 %vm232_vm1, %v3260_v8 }
  0x55   : > { %2944 = vmatprep.mubr.msk.f32.mxu1 %vm232_vm1, %v3427_v43 }
  0x57   : > { %2971 = vmatmul.mubr.msk.f32.gmra.mxu0 %vm232_vm1, %v3277_v12 }
  0x58   : > { %2945 = vmatmul.mubr.msk.f32.gmra.mxu1 %vm232_vm1, %v3441_v45  ;;  %2973 = vmatprep.mubr.msk.f32.mxu0 %vm232_vm1, %v3287_v14 }
  0x59   : > { %2947 = vmatprep.mubr.msk.f32.mxu1 %vm232_vm1, %v3447_v47 }
  0x5b   : > { %2974 = vmatmul.mubr.msk.f32.gmra.mxu0 %vm232_vm1, %v3303_v16 }
  0x5c   : > { %2948 = vmatmul.mubr.msk.f32.gmra.mxu1 %vm232_vm1, %v3461_v49  ;;  %2976 = vmatprep.mubr.msk.f32.mxu0 %vm232_vm1, %v3309_v18 }
  0x5d   : > { %2950 = vmatprep.mubr.msk.f32.mxu1 %vm232_vm1, %v3467_v51 }
  0x5f   : > { %2977 = vmatmul.mubr.msk.f32.gmra.mxu0 %vm232_vm1, %v3323_v20 }
  0x60   : > { %2951 = vmatmul.mubr.msk.f32.gmra.mxu1 %vm232_vm1, %v3481_v53  ;;  %2979 = vmatprep.mubr.msk.f32.mxu0 %vm232_vm1, %v3555_v58 }
  0x61   : > { %2953 = vmatprep.mubr.msk.f32.mxu1 %vm232_vm1, %v2504_v57 }
  0x63   : > { %2980 = vmatmul.mubr.msk.f32.gmra.mxu0 %vm232_vm1, %v3566_v60 }
  0x64   : > { %2954 = vmatmul.mubr.msk.f32.gmra.mxu1 %vm232_vm1, %v2505_v59  ;;  %3010 = vmatprep.mubr.msk.f32.mxu0 %vm232_vm1, %v3364_v31 }
  0x65   : > { %2984 = vmatprep.mubr.msk.f32.mxu1 %vm232_vm1, %v3339_v26 }
  0x67   : > { %3011 = vmatmul.mubr.msk.f32.vlgmr.msra.gmra.mxu0 %vm232_vm1, %v3381_v33 }
  0x68   : > { %2985 = vmatmul.mubr.msk.f32.vlgmr.msra.gmra.mxu1 %vm232_vm1, %v3357_v30  ;;  %3061 = vmatpush3.msk.msra.mxu0 %vm281_vm0, %v2678_v56 }
  0x69   : > { %3035 = vmatpush3.msk.msra.mxu1 %vm281_vm0, %v2644_v55  ;;  %2987 = vmatprep.mubr.msk.f32.mxu1 %vm232_vm1, %v3367_v32 }
  0x6a   : > { %3013 = vmatprep.mubr.msk.f32.mxu0 %vm232_vm1, %v3387_v35 }
  0x6b   : > { %3014 = vmatmul.mubr.msk.f32.gmra.mxu0 %vm232_vm1, %v3401_v37 }
  0x6c   : > { %2988 = vmatmul.mubr.msk.f32.gmra.mxu1 %vm232_vm1, %v3384_v34  ;;  %3016 = vmatprep.mubr.msk.f32.mxu0 %vm232_vm1, %v3407_v39 }
  0x6d   : > { %2990 = vmatprep.mubr.msk.f32.mxu1 %vm232_vm1, %v3390_v36 }
  0x6f   : > { %3017 = vmatmul.mubr.msk.f32.gmra.mxu0 %vm232_vm1, %v3421_v41 }
  0x70   : > { %2991 = vmatmul.mubr.msk.f32.gmra.mxu1 %vm232_vm1, %v3404_v38  ;;  %3019 = vmatprep.mubr.msk.f32.mxu0 %vm232_vm1, %v3427_v43 }
  0x71   : > { %2993 = vmatprep.mubr.msk.f32.mxu1 %vm232_vm1, %v3410_v40 }
  0x73   : > { %3020 = vmatmul.mubr.msk.f32.gmra.mxu0 %vm232_vm1, %v3441_v45 }
  0x74   : > { %2994 = vmatmul.mubr.msk.f32.gmra.mxu1 %vm232_vm1, %v3424_v42  ;;  %3022 = vmatprep.mubr.msk.f32.mxu0 %vm232_vm1, %v3447_v47 }
  0x75   : > { %2996 = vmatprep.mubr.msk.f32.mxu1 %vm232_vm1, %v3430_v44 }
  0x77   : > { %3023 = vmatmul.mubr.msk.f32.gmra.mxu0 %vm232_vm1, %v3461_v49 }
  0x78   : > { %2997 = vmatmul.mubr.msk.f32.gmra.mxu1 %vm232_vm1, %v3444_v46  ;;  %3025 = vmatprep.mubr.msk.f32.mxu0 %vm232_vm1, %v3467_v51 }
  0x79   : > { %2999 = vmatprep.mubr.msk.f32.mxu1 %vm232_vm1, %v3450_v48 }
  0x7b   : > { %3026 = vmatmul.mubr.msk.f32.gmra.mxu0 %vm232_vm1, %v3481_v53 }
  0x7c   : > { %3000 = vmatmul.mubr.msk.f32.gmra.mxu1 %vm232_vm1, %v3464_v50  ;;  %3028 = vmatprep.mubr.msk.f32.mxu0 %vm232_vm1, %v2504_v57 }
  0x7d   : > { %3002 = vmatprep.mubr.msk.f32.mxu1 %vm232_vm1, %v3470_v52 }
  0x7f   : > { %3029 = vmatmul.mubr.msk.f32.gmra.mxu0 %vm232_vm1, %v2505_v59 }
  0x80   : > { %3003 = vmatmul.mubr.msk.f32.gmra.mxu1 %vm232_vm1, %v3484_v54  ;;  %3031 = vmatprep.mubr.msk.f32.mxu0 %vm232_vm1, %v2608_v62 }
  0x81   : > { %3005 = vmatprep.mubr.msk.f32.mxu1 %vm232_vm1, %v2572_v61 }
  0x83   : > { %3032 = vmatmul.mubr.msk.f32.gmra.mxu0 %vm232_vm1, %v2609_v0 }
  0x84   : > { %3006 = vmatmul.mubr.msk.f32.gmra.mxu1 %vm232_vm1, %v2573_v63  ;;  %3062 = vmatprep.mubr.msk.f32.mxu0 %vm232_vm1, %v3367_v32 }
  0x85   : > { %3036 = vmatprep.mubr.msk.f32.mxu1 %vm232_vm1, %v3284_v13 }
  0x87   : > { %3063 = vmatmul.mubr.msk.f32.vlgmr.msra.gmra.mxu0 %vm232_vm1, %v3384_v34 }
  0x88   : > { %3037 = vmatmul.mubr.msk.f32.vlgmr.msra.gmra.mxu1 %vm232_vm1, %v3300_v15  ;;  %3065 = vmatprep.mubr.msk.f32.mxu0 %vm232_vm1, %v3390_v36 }
  0x89   : > { %3039 = vmatprep.mubr.msk.f32.mxu1 %vm232_vm1, %v3306_v17 }
  0x8b   : > { %3066 = vmatmul.mubr.msk.f32.gmra.mxu0 %vm232_vm1, %v3404_v38 }
  0x8c   : > { %3040 = vmatmul.mubr.msk.f32.gmra.mxu1 %vm232_vm1, %v3320_v19  ;;  %3068 = vmatprep.mubr.msk.f32.mxu0 %vm232_vm1, %v3410_v40 }
  0x8d   : > { %3042 = vmatprep.mubr.msk.f32.mxu1 %vm232_vm1, %v3247_v4  ;;  %v2677_v4 = vld [vmem:[%s3243_s30 + $0xe2] sm:$0xff]  ;;  %s3903_s30 = scalar_lea.vmem %s3997_s3, %s2432_s27 }
  0x8f   : > { %3069 = vmatmul.mubr.msk.f32.gmra.mxu0 %vm232_vm1, %v3424_v42 }
  0x90   : > { %3043 = vmatmul.mubr.msk.f32.gmra.mxu1 %vm232_vm1, %v3254_v6  ;;  %3071 = vmatprep.mubr.msk.f32.mxu0 %vm232_vm1, %v3430_v44 }
  0x91   : > { %3045 = vmatprep.mubr.msk.f32.mxu1 %vm232_vm1, %v3260_v8 }
  0x93   : > { %3072 = vmatmul.mubr.msk.f32.gmra.mxu0 %vm232_vm1, %v3444_v46 }
  0x94   : > { %3046 = vmatmul.mubr.msk.f32.gmra.mxu1 %vm232_vm1, %v3277_v12  ;;  %3074 = vmatprep.mubr.msk.f32.mxu0 %vm232_vm1, %v3450_v48 }
  0x95   : > { %3048 = vmatprep.mubr.msk.f32.mxu1 %vm232_vm1, %v3287_v14 }
  0x97   : > { %3075 = vmatmul.mubr.msk.f32.gmra.mxu0 %vm232_vm1, %v3464_v50 }
  0x98   : > { %3049 = vmatmul.mubr.msk.f32.gmra.mxu1 %vm232_vm1, %v3303_v16  ;;  %3077 = vmatprep.mubr.msk.f32.mxu0 %vm232_vm1, %v3470_v52 }
  0x99   : > { %3051 = vmatprep.mubr.msk.f32.mxu1 %vm232_vm1, %v3309_v18 }
  0x9b   : > { %3078 = vmatmul.mubr.msk.f32.gmra.mxu0 %vm232_vm1, %v3484_v54 }
  0x9c   : > { %3052 = vmatmul.mubr.msk.f32.gmra.mxu1 %vm232_vm1, %v3323_v20  ;;  %3080 = vmatprep.mubr.msk.f32.mxu0 %vm232_vm1, %v2572_v61 }
  0x9d   : > { %3054 = vmatprep.mubr.msk.f32.mxu1 %vm232_vm1, %v3555_v58 }
  0x9f   : > { %3081 = vmatmul.mubr.msk.f32.gmra.mxu0 %vm232_vm1, %v2573_v63 }
  0xa0   : > { %3055 = vmatmul.mubr.msk.f32.gmra.mxu1 %vm232_vm1, %v3566_v60  ;;  %3083 = vmatprep.mubr.msk.f32.mxu0 %vm232_vm1, %v2676_v2 }
  0xa1   : > { %3057 = vmatprep.mubr.msk.f32.mxu1 %vm232_vm1, %v2642_v1 }
  0xa3   : > { %3084 = vmatmul.mubr.msk.f32.gmra.mxu0 %vm232_vm1, %v2677_v4 }
  0xa4   : > { %3058 = vmatmul.mubr.msk.f32.gmra.mxu1 %vm232_vm1, %v2643_v3 }
  0xd7   : > { %v2856_v5 = vpop.f32.mrf.mxu0 }
  0xd8   : > { %v2868_v6 = vpop.f32.mrf.mxu1 }
  0xd9   : > { %v351_v7 = vpop.f32.mrf.mxu0 }
  0xda   : > { %v391_v8 = vpop.f32.mrf.mxu1 }
  0xdb   : > { %v2859_v9 = vpop.f32.mrf.mxu0 }
  0xdc   : > { %v2871_v10 = vpop.f32.mrf.mxu1 }
  0xdd   : > { %v361_v11 = vpop.f32.mrf.mxu0 }
  0xde   : > { %v401_v12 = vpop.f32.mrf.mxu1 }
  0xdf   : > { %v2862_v13 = vpop.f32.mrf.mxu0 }
  0xe0   : > { %v2874_v14 = vpop.f32.mrf.mxu1 }
  0xe1   : > { %v371_v15 = vpop.f32.mrf.mxu0 }
  0xe2   : > { %v411_v16 = vpop.f32.mrf.mxu1 }
  0xe3   : > { %v2865_v17 = vpop.f32.mrf.mxu0 }
  0xe4   : > { %v2877_v18 = vpop.f32.mrf.mxu1 }
  0xe5   : > { %v381_v19 = vpop.f32.mrf.mxu0 }
  0xe6   : > { %v3697_v20 = vpop.f32.mrf.mxu1 }
  0xe7   : > { %v2908_v22 = vpop.f32.mrf.mxu0 }
  0xe8   : > { %v2882_v21 = vpop.f32.mrf.mxu1 }
  0xe9   : > { %v553_v23 = vadd.f32 %v2882_v21, %v2856_v5  ;;  %v761_v25 = vpop.f32.mrf.mxu0 }
  0xea   : > { %v547_v24 = vpop.f32.mrf.mxu1 }
  0xeb   : > { %v3699_v26 = vadd.f32 %v2908_v22, %v553_v23  ;;  %v548_v27 = vadd.f32 %v547_v24, %v351_v7  ;;  %v2911_v29 = vpop.f32.mrf.mxu0 }
  0xec   : > { %v2885_v28 = vpop.f32.mrf.mxu1 }
  0xed   : > { %v3701_v30 = vadd.f32 %v761_v25, %v548_v27  ;;  %v563_v31 = vadd.f32 %v2885_v28, %v2859_v9  ;;  %v771_v33 = vpop.f32.mrf.mxu0 }
  0xee   : > { %v557_v32 = vpop.f32.mrf.mxu1 }
  0xef   : > { %v3703_v34 = vadd.f32 %v2911_v29, %v563_v31  ;;  %v558_v35 = vadd.f32 %v557_v32, %v361_v11  ;;  %v2914_v37 = vpop.f32.mrf.mxu0 }
  0xf0   : > { %v2888_v36 = vpop.f32.mrf.mxu1 }
  0xf1   : > { %v3705_v38 = vadd.f32 %v771_v33, %v558_v35  ;;  %v573_v39 = vadd.f32 %v2888_v36, %v2862_v13  ;;  %v781_v41 = vpop.f32.mrf.mxu0 }
  0xf2   : > { %v567_v40 = vpop.f32.mrf.mxu1 }
  0xf3   : > { %v3707_v42 = vadd.f32 %v2914_v37, %v573_v39  ;;  %v568_v43 = vadd.f32 %v567_v40, %v371_v15  ;;  %v2917_v45 = vpop.f32.mrf.mxu0 }
  0xf4   : > { %v2891_v44 = vpop.f32.mrf.mxu1 }
  0xf5   : > { %v3709_v46 = vadd.f32 %v781_v41, %v568_v43  ;;  %v583_v47 = vadd.f32 %v2891_v44, %v2865_v17  ;;  %v791_v49 = vpop.f32.mrf.mxu0 }
  0xf6   : > { %v577_v48 = vpop.f32.mrf.mxu1 }
  0xf7   : > { %v3711_v50 = vadd.f32 %v2917_v45, %v583_v47  ;;  %v578_v51 = vadd.f32 %v577_v48, %v381_v19  ;;  %v2920_v53 = vpop.f32.mrf.mxu0 }
  0xf8   : > { %v2894_v52 = vpop.f32.mrf.mxu1 }
  0xf9   : > { %v3713_v54 = vadd.f32 %v791_v49, %v578_v51  ;;  %v593_v55 = vadd.f32 %v2894_v52, %v2868_v6  ;;  %v801_v57 = vpop.f32.mrf.mxu0 }
  0xfa   : > { %v587_v56 = vpop.f32.mrf.mxu1 }
  0xfb   : > { %v3715_v58 = vadd.f32 %v2920_v53, %v593_v55  ;;  %v588_v59 = vadd.f32 %v587_v56, %v391_v8  ;;  %v2923_v61 = vpop.f32.mrf.mxu0 }
  0xfc   : > { %v2897_v60 = vpop.f32.mrf.mxu1 }
  0xfd   : > { %v3717_v62 = vadd.f32 %v801_v57, %v588_v59  ;;  %v603_v63 = vadd.f32 %v2897_v60, %v2871_v10  ;;  %v811_v1 = vpop.f32.mrf.mxu0 }
  0xfe   : > { %v597_v0 = vpop.f32.mrf.mxu1 }
  0xff   : > { %v3719_v2 = vadd.f32 %v2923_v61, %v603_v63  ;;  %v598_v3 = vadd.f32 %v597_v0, %v401_v12  ;;  %v2926_v5 = vpop.f32.mrf.mxu0 }
 0x100   : > { %v2900_v4 = vpop.f32.mrf.mxu1 }
 0x101   : > { %v3721_v7 = vadd.f32 %v811_v1, %v598_v3  ;;  %v613_v6 = vadd.f32 %v2900_v4, %v2874_v14  ;;  %v821_v11 = vpop.f32.mrf.mxu0 }
 0x102   : > { %v607_v9 = vpop.f32.mrf.mxu1 }
 0x103   : > { %v3723_v13 = vadd.f32 %v2926_v5, %v613_v6  ;;  %v608_v8 = vadd.f32 %v607_v9, %v411_v16  ;;  %v2929_v17 = vpop.f32.mrf.mxu0 }
 0x104   : > { %v2903_v15 = vpop.f32.mrf.mxu1 }
 0x105   : > { %v3725_v19 = vadd.f32 %v821_v11, %v608_v8  ;;  %v623_v10 = vadd.f32 %v2903_v15, %v2877_v18  ;;  %v831_v22 = vpop.f32.mrf.mxu0 }
 0x106   : > { %v617_v21 = vpop.f32.mrf.mxu1 }
 0x107   : > { %v3727_v23 = vadd.f32 %v2929_v17, %v623_v10  ;;  %v618_v12 = vadd.f32 %v617_v21, %v3697_v20  ;;  %v2960_v25 = vpop.f32.mrf.mxu0 }
 0x108   : > { %v2934_v24 = vpop.f32.mrf.mxu1 }
 0x109   : > { %v3730_v27 = vadd.f32 %v831_v22, %v618_v12  ;;  %v3732_v28 = vpop.f32.mrf.mxu0 }
 0x10a   : > { %v994_v14 = vpop.f32.mrf.mxu1 }
 0x10b   : > { %3998 = vst [vmem:[#allocation2_spill] sm:$0xff] %v3730_v27  ;;  %v3734_v16 = vpop.f32.mrf.mxu0 }
 0x10c   : > { %v2937_v29 = vpop.f32.mrf.mxu1 }
 0x10d   : > { %v3736_v32 = vpop.f32.mrf.mxu0 }
 0x10e   : > { %v1004_v31 = vpop.f32.mrf.mxu1 }
 0x10f   : > { %v3738_v33 = vpop.f32.mrf.mxu0 }
 0x110   : > { %v2940_v18 = vpop.f32.mrf.mxu1 }
 0x111   : > { %v3740_v36 = vpop.f32.mrf.mxu0 }
 0x112   : > { %v1014_v35 = vpop.f32.mrf.mxu1 }
 0x113   : > { %v3742_v37 = vpop.f32.mrf.mxu0 }
 0x114   : > { %v2943_v20 = vpop.f32.mrf.mxu1 }
 0x115   : > { %v3744_v40 = vpop.f32.mrf.mxu0 }
 0x116   : > { %v1024_v39 = vpop.f32.mrf.mxu1 }
 0x117   : > { %v3748_v43 = vpop.f32.mrf.mxu0 }
 0x118   : > { %v3746_v41 = vpop.f32.mrf.mxu1 }
 0x119   : > { %v3752_v45 = vpop.f32.mrf.mxu0 }
 0x11a   : > { %v3750_v44 = vpop.f32.mrf.mxu1 }
 0x11b   : > { %v3756_v48 = vpop.f32.mrf.mxu0 }
 0x11c   : > { %v3754_v47 = vpop.f32.mrf.mxu1 }
 0x11d   : > { %v3760_v51 = vpop.f32.mrf.mxu0 }
 0x11e   : > { %v3758_v49 = vpop.f32.mrf.mxu1 }
 0x11f   : > { %v3764_v53 = vpop.f32.mrf.mxu0 }
 0x120   : > { %v3762_v52 = vpop.f32.mrf.mxu1 }
 0x121   : > { %v3768_v56 = vpop.f32.mrf.mxu0 }
 0x122   : > { %v3766_v55 = vpop.f32.mrf.mxu1 }
 0x123   : > { %v3772_v59 = vpop.f32.mrf.mxu0 }
 0x124   : > { %v3770_v57 = vpop.f32.mrf.mxu1  ;;  %3999 = vst [vmem:[#allocation3_spill] sm:$0xff] %v3772_v59 }
 0x125   : > { %v3776_v61 = vpop.f32.mrf.mxu0 }
 0x126   : > { %v3774_v60 = vpop.f32.mrf.mxu1  ;;  %4001 = vst [vmem:[#allocation5_spill] sm:$0xff] %v3776_v61 }
 0x127   : > { %4000 = vst [vmem:[#allocation4_spill] sm:$0xff] %v3774_v60  ;;  %v3012_v0 = vpop.f32.mrf.mxu0 }
 0x128   : > { %v2986_v63 = vpop.f32.mrf.mxu1 }
 0x129   : > { %v1687_v3 = vpop.f32.mrf.mxu0 }
 0x12a   : > { %v1454_v1 = vpop.f32.mrf.mxu1 }
 0x12b   : > { %v3778_v5 = vpop.f32.mrf.mxu0 }
 0x12c   : > { %v2989_v4 = vpop.f32.mrf.mxu1 }
 0x12d   : > { %v3782_v9 = vpop.f32.mrf.mxu0 }
 0x12e   : > { %v3780_v6 = vpop.f32.mrf.mxu1  ;;  %4002 = vst [vmem:[#allocation6_spill] sm:$0xff] %v3782_v9 }
 0x12f   : > { %v3786_v8 = vpop.f32.mrf.mxu0 }
 0x130   : > { %v3784_v11 = vpop.f32.mrf.mxu1  ;;  %4003 = vst [vmem:[#allocation7_spill] sm:$0xff] %v3786_v8 }
 0x131   : > { %v3790_v17 = vpop.f32.mrf.mxu0 }
 0x132   : > { %v3788_v15 = vpop.f32.mrf.mxu1  ;;  %4004 = vst [vmem:[#allocation8_spill] sm:$0xff] %v3790_v17  ;;  %v1074_v17 = vadd.f32 %v2934_v24, %v3699_v26  ;;  %v1075_v26 = vadd.f32 %v1004_v31, %v3705_v38  ;;  %v1078_v24 = vadd.f32 %v2940_v18, %v3707_v42  ;;  %v1079_v42 = vadd.f32 %v1024_v39, %v3713_v54 }
 0x133   : > { %v3794_v21 = vpop.f32.mrf.mxu0  ;;  %v1081_v54 = vadd.f32 %v3750_v44, %v3717_v62  ;;  %v1086_v39 = vadd.f32 %v3762_v52, %v3723_v13  ;;  %v1085_v62 = vadd.f32 %v3766_v55, %v3725_v19 }
 0x134   : > { %v3792_v10 = vpop.f32.mrf.mxu1  ;;  %4006 = vst [vmem:[#allocation10_spill] sm:$0xff] %v3794_v21  ;;  %v1305_v18 = vadd.f32 %v3736_v32, %v1075_v26 }
 0x135   : > { %4005 = vst [vmem:[#allocation9_spill] sm:$0xff] %v3792_v10  ;;  %v3798_v12 = vpop.f32.mrf.mxu0 }
 0x136   : > { %v3796_v22 = vpop.f32.mrf.mxu1  ;;  %4007 = vst [vmem:[#allocation11_spill] sm:$0xff] %v3798_v12  ;;  %v1073_v12 = vadd.f32 %v994_v14, %v3701_v30 }
 0x137   : > { %v3802_v60 = vpop.f32.mrf.mxu0 }
 0x138   : > { %v3800_v61 = vpop.f32.mrf.mxu1  ;;  %4009 = vst [vmem:[#allocation13_spill] sm:$0xff] %v3802_v60  ;;  %v1303_v30 = vadd.f32 %v3732_v28, %v1073_v12  ;;  %v1308_v28 = vadd.f32 %v3738_v33, %v1078_v24  ;;  %v1084_v33 = vadd.f32 %v3754_v47, %v3719_v2  ;;  %v4015_v12 = vld [vmem:[#allocation3_spill] sm:$0xff] }
 0x139   : > { %4008 = vst [vmem:[#allocation12_spill] sm:$0xff] %v3800_v61  ;;  %v3806_v8 = vpop.f32.mrf.mxu0  ;;  %v4017_v24 = vld [vmem:[#allocation7_spill] sm:$0xff] }
 0x13a   : > { %v3804_v27 = vpop.f32.mrf.mxu1  ;;  %4011 = vst [vmem:[#allocation15_spill] sm:$0xff] %v3806_v8  ;;  %v1076_v8 = vadd.f32 %v2937_v29, %v3703_v34  ;;  %v1080_v34 = vadd.f32 %v2943_v20, %v3711_v50  ;;  %v1533_v31 = vadd.f32 %v1454_v1, %v1303_v30  ;;  %v1538_v13 = vadd.f32 %v3784_v11, %v1308_v28 }
 0x13b   : > { %4010 = vst [vmem:[#allocation14_spill] sm:$0xff] %v3804_v27  ;;  %v3810_v59 = vpop.f32.mrf.mxu0  ;;  %v1304_v27 = vadd.f32 %v2960_v25, %v1074_v17  ;;  %v1077_v25 = vadd.f32 %v1014_v35, %v3709_v46  ;;  %v1082_v46 = vadd.f32 %v3746_v41, %v3715_v58  ;;  %v1083_v58 = vadd.f32 %v3758_v49, %v3721_v7 }
 0x13c   : > { %v3808_v9 = vpop.f32.mrf.mxu1  ;;  %4012 = vst [vmem:[#allocation16_spill] sm:$0xff] %v3810_v59  ;;  %v1306_v38 = vadd.f32 %v3734_v16, %v1076_v8  ;;  %v1310_v32 = vadd.f32 %v3742_v37, %v1080_v34  ;;  %v1766_v44 = vadd.f32 %v1687_v3, %v1533_v31  ;;  %v1088_v7 = vadd.f32 %v3770_v57, %v3727_v23  ;;  %v4018_v30 = vld [vmem:[#allocation9_spill] sm:$0xff] }
 0x13d   : > { %v3815_v21 = vpop.f32.mrf.mxu0  ;;  %v1534_v14 = vadd.f32 %v2986_v63, %v1304_v27  ;;  %v1307_v35 = vadd.f32 %v3740_v36, %v1077_v25  ;;  %v1309_v36 = vadd.f32 %v3744_v40, %v1079_v42  ;;  %v1312_v2 = vadd.f32 %v3748_v43, %v1082_v46  ;;  %v3877_v40 = vld [vmem:[%s3996_s2] ss:$0 sm:$0xff]  ;;  %v4019_v42 = vld [vmem:[#allocation8_spill] sm:$0xff] }
 0x13e   : > { %v3813_v10 = vpop.f32.mrf.mxu1  ;;  %4013 = vst [vmem:[#allocation17_spill] sm:$0xff] %v3815_v21  ;;  %v1536_v20 = vadd.f32 %v2989_v4, %v1306_v38  ;;  %v1535_v37 = vadd.f32 %v3780_v6, %v1305_v18  ;;  %v1311_v49 = vadd.f32 %v3752_v45, %v1081_v54  ;;  %v1314_v1 = vadd.f32 %v3756_v48, %v1084_v33 }
 0x13f   : > { %v3821_v60 = vpop.f32.mrf.mxu0  ;;  %v1767_v16 = vadd.f32 %v3012_v0, %v1534_v14  ;;  %v3883_v23 = vadd.f32 %v3760_v51, %v1083_v58  ;;  %v3886_v57 = vadd.f32 %v3764_v53, %v1086_v39  ;;  %v1537_v3 = vadd.f32 %v3788_v15, %v1307_v35  ;;  %v4016_v51 = vld [vmem:[#allocation6_spill] sm:$0xff] }
 0x140   : > { %v3819_v61 = vpop.f32.mrf.mxu1  ;;  %v1769_v52 = vadd.f32 %v3778_v5, %v1536_v20  ;;  %v3891_v11 = vadd.f32 %v3768_v56, %v1085_v62  ;;  %v3895_v48 = vadd.f32 %v4015_v12, %v1088_v7  ;;  %v1768_v26 = vadd.f32 %v4016_v51, %v1535_v37  ;;  %v4020_v28 = vld [vmem:[#allocation12_spill] sm:$0xff]  ;;  %v4021_v58 = vld [vmem:[#allocation10_spill] sm:$0xff] }
 0x141   : > { %v3832_v59 = vpop.f32.mrf.mxu0  ;;  %v1771_v53 = vadd.f32 %v4017_v24, %v1538_v13  ;;  %v1540_v25 = vadd.f32 %v4018_v30, %v1310_v32  ;;  %v1770_v31 = vadd.f32 %v4019_v42, %v1537_v3  ;;  %v1539_v18 = vadd.f32 %v3796_v22, %v1309_v36  ;;  %v4023_v37 = vld [vmem:[#allocation2_spill] sm:$0xff]  ;;  %v4024_v13 = vld [vmem:[#allocation4_spill] sm:$0xff]  ;;  %v4027_v30 = vld [vmem:[#allocation15_spill] sm:$0xff] }
 0x142   : > { %v3830_v21 = vpop.f32.mrf.mxu1  ;;  %v1542_v46 = vadd.f32 %v4020_v28, %v1312_v2  ;;  %v1544_v12 = vadd.f32 %v3808_v9, %v1314_v1 }
 0x143   : > { %v3839_v17 = vpop.f32.mrf.mxu0  ;;  %v1773_v39 = vadd.f32 %v4021_v58, %v1540_v25 }
 0x144   : > { %v3837_v29 = vpop.f32.mrf.mxu1 }
 0x145   : > { %v3851_v50 = vpop.f32.mrf.mxu0 }
 0x146   : > { %v3849_v27 = vpop.f32.mrf.mxu1 }
 0x147   : > { %v3064_v63 = vpop.f32.mrf.mxu0 }
 0x148   : > { %v3038_v41 = vpop.f32.mrf.mxu1 }
 0x149   : > { %v1997_v0 = vadd.f32 %v3038_v41, %v1767_v16  ;;  %v2147_v47 = vpop.f32.mrf.mxu0  ;;  %v4022_v41 = vld [vmem:[#allocation14_spill] sm:$0xff] }
 0x14a   : > { %v1917_v19 = vpop.f32.mrf.mxu1 }
 0x14b   : > { %v2227_v55 = vadd.f32 %v3064_v63, %v1997_v0  ;;  %v1996_v43 = vadd.f32 %v1917_v19, %v1766_v44  ;;  %v3067_v6 = vpop.f32.mrf.mxu0  ;;  %v1541_v63 = vadd.f32 %v4022_v41, %v1311_v49  ;;  %v1087_v19 = vadd.f32 %v4024_v13, %v4023_v37 }
 0x14c   : > { %v3041_v4 = vpop.f32.mrf.mxu1  ;;  %v1545_v37 = vadd.f32 %v3830_v21, %v3891_v11 }
 0x14d   : > { %v2250_v45 = vadd.f32 %v3877_v40, %v2227_v55  ;;  %v2226_v5 = vadd.f32 %v2147_v47, %v1996_v43  ;;  %v1999_v8 = vadd.f32 %v3041_v4, %v1769_v52  ;;  %v2157_v14 = vpop.f32.mrf.mxu0  ;;  %v4025_v47 = vld [vmem:[#allocation11_spill] sm:$0xff]  ;;  %v4026_v4 = vld [vmem:[#allocation13_spill] sm:$0xff]  ;;  %v1774_v25 = vadd.f32 %v4027_v30, %v1541_v63 }
 0x14e   : > { %v1927_v15 = vpop.f32.mrf.mxu1  ;;  %v1772_v52 = vadd.f32 %v4025_v47, %v1539_v18  ;;  %v4030_v63 = vld [vmem:[#allocation17_spill] sm:$0xff] }
 0x14f   : > { %vm2266_vm3 = vcmp.gt.f32.partialorder %v2250_v45, 0.0  ;;  %v2282_v56 = vmul.f32 0.1, %v2250_v45  ;;  %v2249_v34 = vadd.f32 %v3877_v40, %v2226_v5  ;;  %v2229_v38 = vadd.f32 %v3067_v6, %v1999_v8  ;;  %v3070_v16 = vpop.f32.mrf.mxu0 }
 0x150   : > { %v1998_v35 = vadd.f32 %v1927_v15, %v1768_v26  ;;  %v3044_v54 = vpop.f32.mrf.mxu1  ;;  %v1775_v6 = vadd.f32 %v4026_v4, %v1542_v46  ;;  %v4028_v46 = vld [vmem:[#allocation16_spill] sm:$0xff] }
 0x151   : > { %v2298_v20 = vsel %vm2266_vm3, %v2250_v45, %v2282_v56  ;;  %vm2265_vm4 = vcmp.gt.f32.partialorder %v2249_v34, 0.0  ;;  %v2281_v32 = vmul.f32 0.1, %v2249_v34  ;;  %v2252_v33 = vadd.f32 %v3877_v40, %v2229_v38  ;;  %v2167_v36 = vpop.f32.mrf.mxu0 }
 0x152   : > { %2315 = vst.msk [vmem:[%s3903_s30 + $0x8] sm:$0xff] %vm2313_vm2, %v2298_v20  ;;  %v2228_v62 = vadd.f32 %v2157_v14, %v1998_v35  ;;  %v2001_v44 = vadd.f32 %v3044_v54, %v1771_v53  ;;  %v1937_v22 = vpop.f32.mrf.mxu1  ;;  %v1777_v35 = vadd.f32 %v4028_v46, %v1544_v12  ;;  %v1546_v54 = vadd.f32 %v3819_v61, %v3886_v57 }
 0x153   : > { %v2297_v0 = vsel %vm2265_vm4, %v2249_v34, %v2281_v32  ;;  %vm2268_vm5 = vcmp.gt.f32.partialorder %v2252_v33, 0.0  ;;  %v2284_v2 = vmul.f32 0.1, %v2252_v33  ;;  %v2000_v7 = vadd.f32 %v1937_v22, %v1770_v31  ;;  %v3073_v3 = vpop.f32.mrf.mxu0 }
 0x154   : > { %2314 = vst.msk [vmem:[%s3903_s30] sm:$0xff] %vm2313_vm2, %v2297_v0  ;;  %v2251_v49 = vadd.f32 %v3877_v40, %v2228_v62  ;;  %v2231_v55 = vadd.f32 %v3070_v16, %v2001_v44  ;;  %v3047_v43 = vpop.f32.mrf.mxu1  ;;  %v1543_v34 = vadd.f32 %v3813_v10, %v3883_v23 }
 0x155   : > { %v2300_v45 = vsel %vm2268_vm5, %v2252_v33, %v2284_v2  ;;  %v2230_v5 = vadd.f32 %v2167_v36, %v2000_v7  ;;  %v2003_v8 = vadd.f32 %v3047_v43, %v1773_v39  ;;  %v2177_v53 = vpop.f32.mrf.mxu0  ;;  %v4029_v39 = vld [vmem:[#allocation5_spill] sm:$0xff]  ;;  %v1779_v7 = vadd.f32 %v3821_v60, %v1546_v54 }
 0x156   : > { %2317 = vst.msk [vmem:[%s3903_s30 + $0x18] sm:$0xff] %vm2313_vm2, %v2300_v45  ;;  %vm2267_vm6 = vcmp.gt.f32.partialorder %v2251_v49, 0.0  ;;  %v2283_v51 = vmul.f32 0.1, %v2251_v49  ;;  %v2254_v26 = vadd.f32 %v3877_v40, %v2231_v55  ;;  %v1947_v24 = vpop.f32.mrf.mxu1  ;;  %v1317_v41 = vadd.f32 %v4029_v39, %v1087_v19 }
 0x157   : > { %v2253_v15 = vadd.f32 %v3877_v40, %v2230_v5  ;;  %v2233_v14 = vadd.f32 %v3073_v3, %v2003_v8  ;;  %v2002_v56 = vadd.f32 %v1947_v24, %v1772_v52  ;;  %v3076_v42 = vpop.f32.mrf.mxu0  ;;  %v1776_v62 = vadd.f32 %v4030_v63, %v1543_v34 }
 0x158   : > { %v2299_v38 = vsel %vm2267_vm6, %v2251_v49, %v2283_v51  ;;  %vm2270_vm7 = vcmp.gt.f32.partialorder %v2254_v26, 0.0  ;;  %v2286_v9 = vmul.f32 0.1, %v2254_v26  ;;  %v3050_v1 = vpop.f32.mrf.mxu1  ;;  %v1548_v49 = vadd.f32 %v3837_v29, %v3895_v48 }
 0x159   : > { %2316 = vst.msk [vmem:[%s3903_s30 + $0x10] sm:$0xff] %vm2313_vm2, %v2299_v38  ;;  %vm2269_vm8 = vcmp.gt.f32.partialorder %v2253_v15, 0.0  ;;  %v2285_v31 = vmul.f32 0.1, %v2253_v15  ;;  %v2256_v18 = vadd.f32 %v3877_v40, %v2233_v14  ;;  %v2232_v28 = vadd.f32 %v2177_v53, %v2002_v56  ;;  %v2187_v20 = vpop.f32.mrf.mxu0 }
 0x15a   : > { %v2302_v10 = vsel %vm2270_vm7, %v2254_v26, %v2286_v9  ;;  %v2005_v23 = vadd.f32 %v3050_v1, %v1775_v6  ;;  %v1957_v16 = vpop.f32.mrf.mxu1  ;;  %v1547_v4 = vadd.f32 %v3849_v27, %v1317_v41  ;;  %v1778_v29 = vadd.f32 %v3832_v59, %v1545_v37 }
 0x15b   : > { %2319 = vst.msk [vmem:[%s3903_s30 + $0x28] sm:$0xff] %vm2313_vm2, %v2302_v10  ;;  %v2301_v32 = vsel %vm2269_vm8, %v2253_v15, %v2285_v31  ;;  %vm2272_vm9 = vcmp.gt.f32.partialorder %v2256_v18, 0.0  ;;  %v2288_v33 = vmul.f32 0.1, %v2256_v18  ;;  %v2255_v58 = vadd.f32 %v3877_v40, %v2232_v28  ;;  %v3079_v22 = vpop.f32.mrf.mxu0 }
 0x15c   : > { %2318 = vst.msk [vmem:[%s3903_s30 + $0x20] sm:$0xff] %vm2313_vm2, %v2301_v32  ;;  %v2235_v44 = vadd.f32 %v3076_v42, %v2005_v23  ;;  %v2004_v61 = vadd.f32 %v1957_v16, %v1774_v25  ;;  %v3053_v57 = vpop.f32.mrf.mxu1  ;;  %v1781_v30 = vadd.f32 %v3839_v17, %v1548_v49  ;;  %v1780_v25 = vadd.f32 %v3851_v50, %v1547_v4 }
 0x15d   : > { %v2304_v36 = vsel %vm2272_vm9, %v2256_v18, %v2288_v33  ;;  %vm2271_vm10 = vcmp.gt.f32.partialorder %v2255_v58, 0.0  ;;  %v2287_v0 = vmul.f32 0.1, %v2255_v58  ;;  %v2007_v2 = vadd.f32 %v3053_v57, %v1777_v35  ;;  %v2197_v52 = vpop.f32.mrf.mxu0 }
 0x15e   : > { %2321 = vst.msk [vmem:[%s3903_s30 + $0x38] sm:$0xff] %vm2313_vm2, %v2304_v36  ;;  %v2258_v13 = vadd.f32 %v3877_v40, %v2235_v44  ;;  %v2234_v19 = vadd.f32 %v2187_v20, %v2004_v61  ;;  %v1967_v47 = vpop.f32.mrf.mxu1 }
 0x15f   : > { %v2303_v55 = vsel %vm2271_vm10, %v2255_v58, %v2287_v0  ;;  %v2237_v43 = vadd.f32 %v3079_v22, %v2007_v2  ;;  %v2006_v3 = vadd.f32 %v1967_v47, %v1776_v62  ;;  %v3082_v6 = vpop.f32.mrf.mxu0 }
 0x160   : > { %2320 = vst.msk [vmem:[%s3903_s30 + $0x30] sm:$0xff] %vm2313_vm2, %v2303_v55  ;;  %vm2274_vm11 = vcmp.gt.f32.partialorder %v2258_v13, 0.0  ;;  %v2290_v60 = vmul.f32 0.1, %v2258_v13  ;;  %v2257_v21 = vadd.f32 %v3877_v40, %v2234_v19  ;;  %v3056_v11 = vpop.f32.mrf.mxu1 }
 0x161   : > { %v2260_v45 = vadd.f32 %v3877_v40, %v2237_v43  ;;  %v2236_v5 = vadd.f32 %v2197_v52, %v2006_v3  ;;  %v2009_v8 = vadd.f32 %v3056_v11, %v1779_v7  ;;  %v2207_v51 = vpop.f32.mrf.mxu0 }
 0x162   : > { %v2306_v48 = vsel %vm2274_vm11, %v2258_v13, %v2290_v60  ;;  %vm2273_vm12 = vcmp.gt.f32.partialorder %v2257_v21, 0.0  ;;  %v2289_v12 = vmul.f32 0.1, %v2257_v21  ;;  %v1977_v27 = vpop.f32.mrf.mxu1 }
 0x163   : > { %2323 = vst.msk [vmem:[%s3903_s30 + $0x48] sm:$0xff] %vm2313_vm2, %v2306_v48  ;;  %vm2276_vm13 = vcmp.gt.f32.partialorder %v2260_v45, 0.0  ;;  %v2292_v26 = vmul.f32 0.1, %v2260_v45  ;;  %v2259_v24 = vadd.f32 %v3877_v40, %v2236_v5  ;;  %v2239_v53 = vadd.f32 %v3082_v6, %v2009_v8  ;;  %v3085_v56 = vpop.f32.mrf.mxu0 }
 0x164   : > { %v2305_v15 = vsel %vm2273_vm12, %v2257_v21, %v2289_v12  ;;  %v2008_v59 = vadd.f32 %v1977_v27, %v1778_v29  ;;  %v3059_v14 = vpop.f32.mrf.mxu1 }
 0x165   : > { %2322 = vst.msk [vmem:[%s3903_s30 + $0x40] sm:$0xff] %vm2313_vm2, %v2305_v15  ;;  %v2308_v34 = vsel %vm2276_vm13, %v2260_v45, %v2292_v26  ;;  %vm2275_vm14 = vcmp.gt.f32.partialorder %v2259_v24, 0.0  ;;  %v2291_v38 = vmul.f32 0.1, %v2259_v24  ;;  %v2262_v9 = vadd.f32 %v3877_v40, %v2239_v53  ;;  %v2217_v35 = vpop.f32.mrf.mxu0 }
 0x166   : > { %2325 = vst.msk [vmem:[%s3903_s30 + $0x58] sm:$0xff] %vm2313_vm2, %v2308_v34  ;;  %v2238_v1 = vadd.f32 %v2207_v51, %v2008_v59  ;;  %v2011_v42 = vadd.f32 %v3059_v14, %v1781_v30  ;;  %v1987_v17 = vpop.f32.mrf.mxu1 }
 0x167   : > { %v2307_v31 = vsel %vm2275_vm14, %v2259_v24, %v2291_v38  ;;  %vm2278_vm15 = vcmp.gt.f32.partialorder %v2262_v9, 0.0  ;;  %v2294_v50 = vmul.f32 0.1, %v2262_v9  ;;  %v2010_v18 = vadd.f32 %v1987_v17, %v1780_v25 }
 0x168   : > { %2324 = vst.msk [vmem:[%s3903_s30 + $0x50] sm:$0xff] %vm2313_vm2, %v2307_v31  ;;  %v2261_v28 = vadd.f32 %v3877_v40, %v2238_v1  ;;  %v2241_v46 = vadd.f32 %v3085_v56, %v2011_v42 }
 0x169   : > { %v2310_v54 = vsel %vm2278_vm15, %v2262_v9, %v2294_v50  ;;  %v2240_v10 = vadd.f32 %v2217_v35, %v2010_v18 }
 0x16a   : > { %2327 = vst.msk [vmem:[%s3903_s30 + $0x68] sm:$0xff] %vm2313_vm2, %v2310_v54  ;;  %vm2277_vm0 = vcmp.gt.f32.partialorder %v2261_v28, 0.0  ;;  %v2293_v23 = vmul.f32 0.1, %v2261_v28  ;;  %v2264_v16 = vadd.f32 %v3877_v40, %v2241_v46 }
 0x16b   : > { %v2263_v20 = vadd.f32 %v3877_v40, %v2240_v10 }
 0x16c   : > { %v2309_v32 = vsel %vm2277_vm0, %v2261_v28, %v2293_v23  ;;  %vm2280_vm1 = vcmp.gt.f32.partialorder %v2264_v16, 0.0  ;;  %v2296_v33 = vmul.f32 0.1, %v2264_v16 }
 0x16d   : > { %2326 = vst.msk [vmem:[%s3903_s30 + $0x60] sm:$0xff] %vm2313_vm2, %v2309_v32  ;;  %vm2279_vm3 = vcmp.gt.f32.partialorder %v2263_v20, 0.0  ;;  %v2295_v58 = vmul.f32 0.1, %v2263_v20 }
 0x16e   : > { %v2312_v39 = vsel %vm2280_vm1, %v2264_v16, %v2296_v33 }
 0x16f   : > { %2329 = vst.msk [vmem:[%s3903_s30 + $0x78] sm:$0xff] %vm2313_vm2, %v2312_v39  ;;  %v2311_v41 = vsel %vm2279_vm3, %v2263_v20, %v2295_v58 }
 0x170   : > { %2328 = vst.msk [vmem:[%s3903_s30 + $0x70] sm:$0xff] %vm2313_vm2, %v2311_v41 }
 0x171 PF: > { %s13_s16 = sadd.s32 1, %s3167_s16   ;;  %s4031_s12 = smov %s3159_s14 }
 0x172   : > { %p10_p7 = scmp.ge.s32.totalorder %s13_s16, 6   ;;  %s4032_s13 = smov %s3163_s15 }
 0x173   : > { %s4033_s14 = smov %s4036_s17  ;;  %s4034_s15 = smov %s4040_s18 }
 0x174   :  { %12 = sbr.rel (!%p10_p7) target bundleno = 3 (0x3), region = 73 }

</bundles_post_ra>
